<compile_context>
chip_gen: v7x
topology: tpu7x:2x2x1
jax: 0.10.0
libtpu: 0.0.40
codegen_flags: <defaults>
</compile_context>

<pallas_src>
import functools

import jax
import jax.numpy as jnp
import numpy as np
from jax.experimental import pallas as pl
from jax.experimental.pallas import tpu as pltpu


def _dice_tile_kernel(x_ref, t_ref, out_ref, *, hw, s_tile, n_classes,
                      softmax, needs_mask):
    # x_ref:   (C, S_TILE, 128) scores (native dtype) for one (batch, tile)
    # t_ref:   (S_TILE, 128)    integer class indices (native dtype)
    # out_ref: (3, C, 128)      f32 partial sums, resident across the p axis
    p = pl.program_id(1)

    @pl.when(p == 0)
    def _():
        out_ref[...] = jnp.zeros_like(out_ref)

    def tile_sums(apply_mask):
        x = x_ref[...].astype(jnp.float32)            # (C, S, 128), cast in VMEM
        t = t_ref[...].astype(jnp.int32)              # (S, 128)

        if softmax:
            # Per-pixel softmax over the (leading) class axis: pure VALU.
            x = x - jnp.max(x, axis=0, keepdims=True)
            x = jnp.exp(x)
            # One exact reciprocal per pixel, then C multiplies.
            x = x * (1.0 / jnp.sum(x, axis=0, keepdims=True))

        valid = None
        if apply_mask:
            # Validity of each (sublane, lane) position vs. the true pixel
            # count HW (covers both Pallas partial-block garbage rows and the
            # wrapper's 128-alignment pad under softmax).
            sub = jax.lax.broadcasted_iota(jnp.int32, (s_tile, 128), 0)
            lane = jax.lax.broadcasted_iota(jnp.int32, (s_tile, 128), 1)
            pix = (p * s_tile + sub) * 128 + lane
            valid = pix < hw                          # (S, 128) bool
            x = jnp.where(valid[None], x, 0.0)        # zero invalid scores

        inter_rows, z_rows, y_rows = [], [], []
        for c in range(n_classes):                    # C is small & static
            xc = x[c]                                 # (S, 128)
            match = t == c
            if valid is not None:
                match = jnp.logical_and(match, valid)
            mc = match.astype(jnp.float32)
            inter_rows.append(jnp.sum(xc * mc, axis=0, keepdims=True))  # (1,128)
            z_rows.append(jnp.sum(xc * xc, axis=0, keepdims=True))
            y_rows.append(jnp.sum(mc, axis=0, keepdims=True))

        inter = jnp.concatenate(inter_rows, axis=0)   # (C, 128)
        zsum = jnp.concatenate(z_rows, axis=0)
        ysum = jnp.concatenate(y_rows, axis=0)
        return jnp.stack([inter, zsum, ysum], axis=0)  # (3, C, 128)

    if needs_mask:
        last = pl.num_programs(1) - 1

        @pl.when(p == last)
        def _():
            out_ref[...] += tile_sums(True)

        @pl.when(p != last)
        def _():
            out_ref[...] += tile_sums(False)
    else:
        out_ref[...] += tile_sums(False)


def dice_loss(inputs, target, weight=None, softmax=False, *,
              block_bytes=4 * 1024 * 1024):
    """Pallas implementation of DiceLoss.forward.

    inputs: (N, C, H, W) scores (any float dtype)
    target: (N, H, W) integer class indices
    """
    N, C, H, W = inputs.shape
    HW = H * W
    if weight is None:
        weight = [1.0] * C
    assert len(weight) == C

    t = target
    if not jnp.issubdtype(t.dtype, jnp.integer):
        t = t.astype(jnp.int32)

    x = inputs.reshape(N, C, HW)
    t = t.reshape(N, HW)

    # Pad the pixel axis to a multiple of 128 once (only if needed) so it can
    # be repacked densely into (sublane, lane). x pads with 0 (no z_sum
    # contribution), t pads with the invalid class C (no mask match).
    hw_pad = ((HW + 127) // 128) * 128
    if hw_pad != HW:
        x = jnp.pad(x, ((0, 0), (0, 0), (0, hw_pad - HW)))
        t = jnp.pad(t, ((0, 0), (0, hw_pad - HW)), constant_values=C)

    S = hw_pad // 128
    x = x.reshape(N, C, S, 128)
    t = t.reshape(N, S, 128)

    x_item = jnp.dtype(x.dtype).itemsize
    t_item = jnp.dtype(t.dtype).itemsize

    # Tile sizing: combined x+t block ~block_bytes, sublane count multiple of 8.
    row_bytes = 128 * (C * x_item + t_item)
    tgt_rows = max(8, (block_bytes // row_bytes) // 8 * 8)
    s_tile = S if tgt_rows >= S else tgt_rows
    grid_p = pl.cdiv(S, s_tile)

    ragged = (S % s_tile) != 0                       # partial last block read
    needs_mask = ragged or (softmax and hw_pad != HW)

    kernel = functools.partial(_dice_tile_kernel, hw=HW, s_tile=s_tile,
                               n_classes=C, softmax=softmax,
                               needs_mask=needs_mask)

    flops_per_px = C * (6 + (12 if softmax else 0))
    cost = pl.CostEstimate(
        flops=int(N * HW * flops_per_px),
        transcendentals=int(N * HW * C) if softmax else 0,
        bytes_accessed=int(N * hw_pad * (C * x_item + t_item)
                           + N * 3 * C * 128 * 4),
    )

    partials = pl.pallas_call(
        kernel,
        out_shape=jax.ShapeDtypeStruct((N, 3, C, 128), jnp.float32),
        grid_spec=pltpu.PrefetchScalarGridSpec(
            num_scalar_prefetch=0,
            grid=(N, grid_p),
            in_specs=[
                pl.BlockSpec((pl.Squeezed(), C, s_tile, 128),
                             lambda n, p: (n, 0, p, 0)),
                pl.BlockSpec((pl.Squeezed(), s_tile, 128),
                             lambda n, p: (n, p, 0)),
            ],
            out_specs=pl.BlockSpec((pl.Squeezed(), 3, C, 128),
                                   lambda n, p: (n, 0, 0, 0)),
        ),
        compiler_params=pltpu.CompilerParams(
            dimension_semantics=("parallel", "arbitrary")),
        cost_estimate=cost,
    )(x, t)

    # Tiny finalize in plain JAX: lane-sum + batch-sum -> per-class dice.
    smooth = 1e-05
    totals = jnp.sum(partials, axis=(0, 3))          # (3, C)
    inter_c, z_c, y_c = totals[0], totals[1], totals[2]
    dice = 1.0 - (2.0 * inter_c + smooth) / (z_c + y_c + smooth)
    w = jnp.asarray(weight, dtype=jnp.float32)
    return jnp.sum(dice * w) / C


def _dice_loss_ref(inputs, target, weight=None, softmax=False):
    """Pure-JAX reference reproducing the PyTorch module semantics."""
    N, C, H, W = inputs.shape
    if softmax:
        inputs = jax.nn.softmax(inputs.astype(jnp.float32), axis=1)
    if weight is None:
        weight = [1.0] * C
    one_hot = jnp.stack([(target == i).astype(jnp.float32) for i in range(C)],
                        axis=1)
    smooth = 1e-05
    loss = 0.0
    for i in range(C):
        score = inputs[:, i].astype(jnp.float32)
        tgt = one_hot[:, i]
        intersect = jnp.sum(score * tgt)
        y_sum = jnp.sum(tgt * tgt)
        z_sum = jnp.sum(score * score)
        dice = 1.0 - (2 * intersect + smooth) / (z_sum + y_sum + smooth)
        loss = loss + dice * weight[i]
    return loss / C


def _check(inputs, target, weight=None, softmax=False, **kw):
    got = jax.block_until_ready(
        dice_loss(inputs, target, weight=weight, softmax=softmax, **kw))
    ref = jax.block_until_ready(
        _dice_loss_ref(inputs, target, weight=weight, softmax=softmax))
    np.testing.assert_allclose(np.asarray(got), np.asarray(ref),
                               rtol=2e-5, atol=1e-5)


if __name__ == "__main__":
    key = jax.random.PRNGKey(0)

    # Primary case: N=2, C=4, H=W=16 (128-aligned, single tile).
    k1, k2, key = jax.random.split(key, 3)
    inputs = jax.random.uniform(k1, (2, 4, 16, 16), dtype=jnp.float32)
    target = jax.random.randint(k2, (2, 16, 16), 0, 4, dtype=jnp.int32)
    _check(inputs, target, softmax=False)
    _check(inputs, target, softmax=True)

    # Multi-tile accumulation path (force tiny tiles -> grid_p > 1).
    k1, k2, key = jax.random.split(key, 3)
    inputs2 = jax.random.uniform(k1, (2, 4, 64, 64), dtype=jnp.float32)
    target2 = jax.random.randint(k2, (2, 64, 64), 0, 4, dtype=jnp.int32)
    _check(inputs2, target2, softmax=True, block_bytes=1)
    _check(inputs2, target2, softmax=False, block_bytes=1)

    # Non-128-aligned pixel count (wrapper pad; masked last tile for softmax),
    # with per-class weights.
    k1, k2, key = jax.random.split(key, 3)
    inputs3 = jax.random.uniform(k1, (1, 3, 10, 10), dtype=jnp.float32)
    target3 = jax.random.randint(k2, (1, 10, 10), 0, 3, dtype=jnp.int32)
    _check(inputs3, target3, weight=[0.5, 1.0, 2.0], softmax=False)
    _check(inputs3, target3, weight=[0.5, 1.0, 2.0], softmax=True)

    # Ragged multi-tile path (partial last block + in-kernel validity mask).
    k1, k2, key = jax.random.split(key, 3)
    inputs4 = jax.random.uniform(k1, (1, 4, 36, 36), dtype=jnp.float32)
    target4 = jax.random.randint(k2, (1, 36, 36), 0, 4, dtype=jnp.int32)
    _check(inputs4, target4, softmax=True, block_bytes=1)

    print("KERNEL_OK")
</pallas_src>

<mosaic_0001>
module attributes {stable_mosaic.version = 11 : i64} {
  func.func @_dice_tile_kernel(%arg0: i32, %arg1: i32, %arg2: memref<1x4x2x128xf32, #tpu.memory_space<vmem>>, %arg3: memref<1x2x128xi32, #tpu.memory_space<vmem>>, %arg4: memref<1x3x4x128xf32, #tpu.memory_space<vmem>>) attributes {dimension_semantics = [#tpu.dimension_semantics<parallel>, #tpu.dimension_semantics<arbitrary>], iteration_bounds = array<i64: 2, 1>, scalar_prefetch = 0 : i64, scratch_operands = 0 : i64, tpu.core_type = #tpu.core_type<tc>, window_params = [{transform_indices = @transform_0, window_bounds = array<i64: 1, 4, 2, 128>}, {transform_indices = @transform_1, window_bounds = array<i64: 1, 2, 128>}, {transform_indices = @transform_2, window_bounds = array<i64: 1, 3, 4, 128>}]} {
    %c0_i32 = arith.constant 0 : i32
    %0 = arith.cmpi eq, %arg1, %c0_i32 : i32
    %1 = arith.extui %0 : i1 to i32
    %c0_i32_0 = arith.constant 0 : i32
    %2 = arith.cmpi ne, %1, %c0_i32_0 : i32
    scf.if %2 {
      %cst_27 = arith.constant 0.000000e+00 : f32
      %76 = vector.broadcast %cst_27 : f32 to vector<3x4x128xf32>
      %c0_28 = arith.constant 0 : index
      %c0_29 = arith.constant 0 : index
      %c0_30 = arith.constant 0 : index
      %c0_31 = arith.constant 0 : index
      %77 = vector.load %arg4[%c0_28, %c0_29, %c0_30, %c0_31] : memref<1x3x4x128xf32, #tpu.memory_space<vmem>>, vector<1x3x4x128xf32>
      %78 = vector.shape_cast %77 : vector<1x3x4x128xf32> to vector<3x4x128xf32>
      %79 = vector.shape_cast %76 : vector<3x4x128xf32> to vector<1x3x4x128xf32>
      tpu.vector_store %arg4[%c0_28, %c0_29, %c0_30, %c0_31], %79 {strides = array<i32>} : memref<1x3x4x128xf32, #tpu.memory_space<vmem>>, vector<1x3x4x128xf32>,
    } else {
    }
    %c0 = arith.constant 0 : index
    %c0_1 = arith.constant 0 : index
    %c0_2 = arith.constant 0 : index
    %c0_3 = arith.constant 0 : index
    %3 = vector.load %arg4[%c0, %c0_1, %c0_2, %c0_3] : memref<1x3x4x128xf32, #tpu.memory_space<vmem>>, vector<1x3x4x128xf32>
    %4 = vector.shape_cast %3 : vector<1x3x4x128xf32> to vector<3x4x128xf32>
    %c0_4 = arith.constant 0 : index
    %c0_5 = arith.constant 0 : index
    %c0_6 = arith.constant 0 : index
    %c0_7 = arith.constant 0 : index
    %5 = vector.load %arg2[%c0_4, %c0_5, %c0_6, %c0_7] : memref<1x4x2x128xf32, #tpu.memory_space<vmem>>, vector<1x4x2x128xf32>
    %6 = vector.shape_cast %5 : vector<1x4x2x128xf32> to vector<4x2x128xf32>
    %c0_8 = arith.constant 0 : index
    %c0_9 = arith.constant 0 : index
    %c0_10 = arith.constant 0 : index
    %7 = vector.load %arg3[%c0_8, %c0_9, %c0_10] : memref<1x2x128xi32, #tpu.memory_space<vmem>>, vector<1x2x128xi32>
    %8 = vector.shape_cast %7 : vector<1x2x128xi32> to vector<2x128xi32>
    %9 = vector.extract_strided_slice %6 {offsets = [0, 0, 0], sizes = [1, 2, 128], strides = [1, 1, 1]} : vector<4x2x128xf32> to vector<1x2x128xf32>
    %10 = vector.shape_cast %9 : vector<1x2x128xf32> to vector<2x128xf32>
    %c0_i32_11 = arith.constant 0 : i32
    %11 = vector.broadcast %c0_i32_11 : i32 to vector<2x128xi32>
    %12 = arith.cmpi eq, %8, %11 : vector<2x128xi32>
    %13 = arith.extui %12 : vector<2x128xi1> to vector<2x128xi32>
    %14 = arith.sitofp %13 : vector<2x128xi32> to vector<2x128xf32>
    %15 = arith.mulf %10, %14 : vector<2x128xf32>
    %cst = arith.constant dense<0.000000e+00> : vector<128xf32>
    %16 = vector.multi_reduction <add>, %15, %cst [0] : vector<2x128xf32> to vector<128xf32>
    %17 = vector.shape_cast %16 : vector<128xf32> to vector<1x128xf32>
    %18 = arith.mulf %10, %10 : vector<2x128xf32>
    %cst_12 = arith.constant dense<0.000000e+00> : vector<128xf32>
    %19 = vector.multi_reduction <add>, %18, %cst_12 [0] : vector<2x128xf32> to vector<128xf32>
    %20 = vector.shape_cast %19 : vector<128xf32> to vector<1x128xf32>
    %cst_13 = arith.constant dense<0.000000e+00> : vector<128xf32>
    %21 = vector.multi_reduction <add>, %14, %cst_13 [0] : vector<2x128xf32> to vector<128xf32>
    %22 = vector.shape_cast %21 : vector<128xf32> to vector<1x128xf32>
    %23 = vector.extract_strided_slice %6 {offsets = [1, 0, 0], sizes = [1, 2, 128], strides = [1, 1, 1]} : vector<4x2x128xf32> to vector<1x2x128xf32>
    %24 = vector.shape_cast %23 : vector<1x2x128xf32> to vector<2x128xf32>
    %c1_i32 = arith.constant 1 : i32
    %25 = vector.broadcast %c1_i32 : i32 to vector<2x128xi32>
    %26 = arith.cmpi eq, %8, %25 : vector<2x128xi32>
    %27 = arith.extui %26 : vector<2x128xi1> to vector<2x128xi32>
    %28 = arith.sitofp %27 : vector<2x128xi32> to vector<2x128xf32>
    %29 = arith.mulf %24, %28 : vector<2x128xf32>
    %cst_14 = arith.constant dense<0.000000e+00> : vector<128xf32>
    %30 = vector.multi_reduction <add>, %29, %cst_14 [0] : vector<2x128xf32> to vector<128xf32>
    %31 = vector.shape_cast %30 : vector<128xf32> to vector<1x128xf32>
    %32 = arith.mulf %24, %24 : vector<2x128xf32>
    %cst_15 = arith.constant dense<0.000000e+00> : vector<128xf32>
    %33 = vector.multi_reduction <add>, %32, %cst_15 [0] : vector<2x128xf32> to vector<128xf32>
    %34 = vector.shape_cast %33 : vector<128xf32> to vector<1x128xf32>
    %cst_16 = arith.constant dense<0.000000e+00> : vector<128xf32>
    %35 = vector.multi_reduction <add>, %28, %cst_16 [0] : vector<2x128xf32> to vector<128xf32>
    %36 = vector.shape_cast %35 : vector<128xf32> to vector<1x128xf32>
    %37 = vector.extract_strided_slice %6 {offsets = [2, 0, 0], sizes = [1, 2, 128], strides = [1, 1, 1]} : vector<4x2x128xf32> to vector<1x2x128xf32>
    %38 = vector.shape_cast %37 : vector<1x2x128xf32> to vector<2x128xf32>
    %c2_i32 = arith.constant 2 : i32
    %39 = vector.broadcast %c2_i32 : i32 to vector<2x128xi32>
    %40 = arith.cmpi eq, %8, %39 : vector<2x128xi32>
    %41 = arith.extui %40 : vector<2x128xi1> to vector<2x128xi32>
    %42 = arith.sitofp %41 : vector<2x128xi32> to vector<2x128xf32>
    %43 = arith.mulf %38, %42 : vector<2x128xf32>
    %cst_17 = arith.constant dense<0.000000e+00> : vector<128xf32>
    %44 = vector.multi_reduction <add>, %43, %cst_17 [0] : vector<2x128xf32> to vector<128xf32>
    %45 = vector.shape_cast %44 : vector<128xf32> to vector<1x128xf32>
    %46 = arith.mulf %38, %38 : vector<2x128xf32>
    %cst_18 = arith.constant dense<0.000000e+00> : vector<128xf32>
    %47 = vector.multi_reduction <add>, %46, %cst_18 [0] : vector<2x128xf32> to vector<128xf32>
    %48 = vector.shape_cast %47 : vector<128xf32> to vector<1x128xf32>
    %cst_19 = arith.constant dense<0.000000e+00> : vector<128xf32>
    %49 = vector.multi_reduction <add>, %42, %cst_19 [0] : vector<2x128xf32> to vector<128xf32>
    %50 = vector.shape_cast %49 : vector<128xf32> to vector<1x128xf32>
    %51 = vector.extract_strided_slice %6 {offsets = [3, 0, 0], sizes = [1, 2, 128], strides = [1, 1, 1]} : vector<4x2x128xf32> to vector<1x2x128xf32>
    %52 = vector.shape_cast %51 : vector<1x2x128xf32> to vector<2x128xf32>
    %c3_i32 = arith.constant 3 : i32
    %53 = vector.broadcast %c3_i32 : i32 to vector<2x128xi32>
    %54 = arith.cmpi eq, %8, %53 : vector<2x128xi32>
    %55 = arith.extui %54 : vector<2x128xi1> to vector<2x128xi32>
    %56 = arith.sitofp %55 : vector<2x128xi32> to vector<2x128xf32>
    %57 = arith.mulf %52, %56 : vector<2x128xf32>
    %cst_20 = arith.constant dense<0.000000e+00> : vector<128xf32>
    %58 = vector.multi_reduction <add>, %57, %cst_20 [0] : vector<2x128xf32> to vector<128xf32>
    %59 = vector.shape_cast %58 : vector<128xf32> to vector<1x128xf32>
    %60 = arith.mulf %52, %52 : vector<2x128xf32>
    %cst_21 = arith.constant dense<0.000000e+00> : vector<128xf32>
    %61 = vector.multi_reduction <add>, %60, %cst_21 [0] : vector<2x128xf32> to vector<128xf32>
    %62 = vector.shape_cast %61 : vector<128xf32> to vector<1x128xf32>
    %cst_22 = arith.constant dense<0.000000e+00> : vector<128xf32>
    %63 = vector.multi_reduction <add>, %56, %cst_22 [0] : vector<2x128xf32> to vector<128xf32>
    %64 = vector.shape_cast %63 : vector<128xf32> to vector<1x128xf32>
    %65 = tpu.concatenate %17, %31, %45, %59 in 0 : vector<1x128xf32>, vector<1x128xf32>, vector<1x128xf32>, vector<1x128xf32> -> vector<4x128xf32>
    %66 = tpu.concatenate %20, %34, %48, %62 in 0 : vector<1x128xf32>, vector<1x128xf32>, vector<1x128xf32>, vector<1x128xf32> -> vector<4x128xf32>
    %67 = tpu.concatenate %22, %36, %50, %64 in 0 : vector<1x128xf32>, vector<1x128xf32>, vector<1x128xf32>, vector<1x128xf32> -> vector<4x128xf32>
    %68 = vector.shape_cast %65 : vector<4x128xf32> to vector<1x4x128xf32>
    %69 = vector.shape_cast %66 : vector<4x128xf32> to vector<1x4x128xf32>
    %70 = vector.shape_cast %67 : vector<4x128xf32> to vector<1x4x128xf32>
    %71 = tpu.concatenate %68, %69, %70 in 0 : vector<1x4x128xf32>, vector<1x4x128xf32>, vector<1x4x128xf32> -> vector<3x4x128xf32>
    %72 = arith.addf %4, %71 : vector<3x4x128xf32>
    %c0_23 = arith.constant 0 : index
    %c0_24 = arith.constant 0 : index
    %c0_25 = arith.constant 0 : index
    %c0_26 = arith.constant 0 : index
    %73 = vector.load %arg4[%c0_23, %c0_24, %c0_25, %c0_26] : memref<1x3x4x128xf32, #tpu.memory_space<vmem>>, vector<1x3x4x128xf32>
    %74 = vector.shape_cast %73 : vector<1x3x4x128xf32> to vector<3x4x128xf32>
    %75 = vector.shape_cast %72 : vector<3x4x128xf32> to vector<1x3x4x128xf32>
    tpu.vector_store %arg4[%c0_23, %c0_24, %c0_25, %c0_26], %75 {strides = array<i32>} : memref<1x3x4x128xf32, #tpu.memory_space<vmem>>, vector<1x3x4x128xf32>,
    return
  }
  func.func @transform_0(%arg0: i32, %arg1: i32) -> (i32, i32, i32, i32) {
    %c0_i32 = arith.constant 0 : i32
    %c0_i32_0 = arith.constant 0 : i32
    %c0_i32_1 = arith.constant 0 : i32
    return %arg0, %c0_i32, %arg1, %c0_i32_0 : i32, i32, i32, i32
  }
  func.func @transform_1(%arg0: i32, %arg1: i32) -> (i32, i32, i32) {
    %c0_i32 = arith.constant 0 : i32
    %c0_i32_0 = arith.constant 0 : i32
    return %arg0, %arg1, %c0_i32 : i32, i32, i32
  }
  func.func @transform_2(%arg0: i32, %arg1: i32) -> (i32, i32, i32, i32) {
    %c0_i32 = arith.constant 0 : i32
    %c0_i32_0 = arith.constant 0 : i32
    %c0_i32_1 = arith.constant 0 : i32
    %c0_i32_2 = arith.constant 0 : i32
    return %arg0, %c0_i32, %c0_i32_0, %c0_i32_1 : i32, i32, i32, i32
  }
}

</mosaic_0001>

<bundles_post_ra>
// kernel: tpu_custom_call.1
= control target key start
LH: loop header
LB: loop body
LE: loop exit
PB: predicated region body
PF: predicated region fallthrough
CT: control target
= control target key end

     0   :  { %7 = vsyncpa [#allocation3], 0  ;;  %s1007_s0 = inlined_call_operand.hbm [shape: f32[2,4,2,128], index: 0, kind: input, shape index: {}]   ;;  %s1008_s1 = inlined_call_operand.hbm [shape: s32[2,2,128], index: 1, kind: input, shape index: {}]   ;;  %s1009_s2 = inlined_call_operand.hbm [shape: f32[2,3,4,128], index: 2, kind: output, shape index: {}]  }
   0x1   :  { %9 = vsyncpa [#allocation3 + $0x1], 0 }
   0x2   :  { %10 = vsyncpa [#allocation6], 0 }
   0x3   :  { %12 = vsyncpa [#allocation6 + $0x1], 0 }
   0x4   :  { %13 = vsyncpa [#allocation4], 0 }
   0x5   :  { %15 = vsyncpa [#allocation4 + $0x1], 0  ;;  %s740_s9 = smov 0   ;;  %s742_s10 = smov 0  }
   0x6   :  { %s744_s11 = smov 0   ;;  %s746_s12 = smov 0  }
   0x7   :  { %s748_s13 = smov 0   ;;  %s750_s14 = smov 0  }
   0x8 LB: > { %s475_s15 = sadd.s32 4294967295, %s715_s14   ;;  %s476_s16 = sadd.s32 4294967294, %s715_s14   ;;  %s715_s14 = sphi %s750_s14, %s21_s14   ;;  %s711_s13 = sphi %s748_s13, %s1028_s13   ;;  %s707_s12 = sphi %s746_s12, %s1027_s12   ;;  %s703_s11 = sphi %s744_s11, %s1026_s11   ;;  %s699_s10 = sphi %s742_s10, %s1025_s10   ;;  %s695_s9 = sphi %s740_s9, %s1024_s9  }
   0x9   : > { %s33_s17 = sadd.s32 1, %s711_s13  ;;  %s42_s18 = sadd.s32 1, %s703_s11 }
   0xa   : > { %p35_p0 = scmp.ge.s32.totalorder %s33_s17, 2  ;;  %p49_p1 = scmp.ne.s32.totalorder %s703_s11, %s699_s10 }
   0xb   : > { %p50_p2 = scmp.eq.s32.totalorder %s715_s14, 0  ;;  %p55_p3 = scmp.ne.s32.totalorder %s699_s10, %s695_s9 }
   0xc   : > { %s1030_s17 = smov (%p35_p0, %s33_s17), 0  ;;  %p56_p5 = scmp.eq.s32.totalorder %s475_s15, 0 }
   0xd   : > { %p781_p4 = por %p50_p2, %p49_p1  ;;  %s37_s20 = ssub.s32 %s711_s13, %s1030_s17 }
   0xe   : > { %p107_p6 = scmp.eq.s32.totalorder %s475_s15, 1  ;;  %p40_p7 = scmp.eq.s32.totalorder %s37_s20, 0 }
   0xf   : > { %p787_p8 = por %p56_p5, %p55_p3  ;;  %p113_p10 = scmp.eq.s32.totalorder %s476_s16, 1 }
  0x10   : > { %p791_p9 = por %p107_p6, %p49_p1  ;;  %p514_p13 = scmp.lt.s32.totalorder %s715_s14, 2 }
  0x11   : > { %s1013_s21 = scalar_select %p787_p8, 1, 0 }
  0x12   : > { %s1014_s22 = scalar_select %p791_p9, 1, 0 }
  0x13   : > { %s796_s23 = scalar_select %p40_p7, %s703_s11, %s42_s18  }
  0x14   : > { %p798_p11 = por %p113_p10, %p55_p3  ;;  %s805_s25 = sand.u32 1, %s703_s11  }
  0x15   : > { %s479_s26 = sshll.u32 %s805_s25, 3  ;;  %s494_s27 = sshll.u32 %s711_s13, 7 }
  0x16   : > { %s1015_s24 = scalar_select %p798_p11, 1, 0 }
  0x17   : > { %s812_s30 = scalar_lea.hbm %s1007_s0, %s494_s27  ;;  %s137_s3 = scalar_lea.vmem [#allocation2], %s479_s26 }
  0x18   : > { %s145_s4 = sshll.u32 %s137_s3, 4  ;;  %p818_p0 = pnand %p514_p13, %p781_p4  ;;  %s814_s4 = int_to_ptr.vmem [resolvable:$true] %s145_s4 }
  0x19   : > { %s134_s6 = scalar_lea.sflag [#allocation3], %s805_s25  ;;  %s569_s7 = scalar_lea.hbm %s812_s30, 128 }
  0x1a   : > { %p570_p2 = scmp.ne.s32.totalorder %s812_s30, %s569_s7  ;;  %p571_p3 = pneg %p818_p0 }
  0x1b   : > { %s574_s16 = scalar_lea.hbm %s1007_s0, 256  ;;  %p575_p4 = scmp.lt.u32.totalorder %s812_s30, %s1007_s0 }
  0x1c   : > { %p572_p5 = pnand %p571_p3, %p570_p2  ;;  %p576_p7 = scmp.lt.u32.totalorder %s574_s16, %s569_s7 }
  0x1d   : > { %p578_p13 = scmp.lt.u32.totalorder %s569_s7, %s812_s30 }
  0x1e   : > { %p573_p6 = pneg %p572_p5  ;;  %p577_p10 = por %p576_p7, %p575_p4 }
  0x20   : > { %p579_p12 = por %p578_p13, %p577_p10 }
  0x22   : > { %p580_p1 = pnand %p579_p12, %p573_p6 }
  0x24   : > { %583 = shalt.err (!%p580_p1)
}
  0x25   : > { %s584_s20 = scalar_lea.vmem %s814_s4, 128  ;;  %s717_s26 = smov [#allocation2]  }
  0x26   : > { %p585_p2 = scmp.ne.s32.totalorder %s814_s4, %s584_s20  ;;  %s589_s27 = sshll.u32 %s717_s26, 4  ;;  %s590_s27 = int_to_ptr.vmem [resolvable:$false] %s589_s27 }
  0x27   : > { %s591_s28 = scalar_lea.vmem %s590_s27, 256  ;;  %p592_p9 = scmp.lt.s32.totalorder %s814_s4, %s590_s27 }
  0x28   : > { %p587_p5 = pnand %p585_p2, %p571_p3  ;;  %p593_p4 = scmp.lt.s32.totalorder %s591_s28, %s584_s20 }
  0x2a   : > { %p588_p11 = pneg %p587_p5  ;;  %p594_p7 = por %p593_p4, %p592_p9 }
  0x2c   : > { %p595_p10 = pnand %p594_p7, %p588_p11 }
  0x2e   : > { %598 = shalt.err (!%p595_p10)
}
  0x2f   : > { %s718_s29 = smov 32   ;;  %s719_s3 = smov 2  }
  0x30   : > { %506 = dma.hbm_to_vmem [thread:$0]  (!%p818_p0), %s812_s30, 128, %s814_s4, %s134_s6, %s718_s29, %s718_s29, %s719_s3  }
  0x31   : > { %p172_p12 = scmp.lt.s32.totalorder %s715_s14, 3  ;;  %s482_s7 = sshll.u32 %s805_s25, 1 }
  0x32   : > { %s483_s8 = sshll.u32 %s711_s13, 5  ;;  %p1017_p9 = scmp.ge.s32.totalorder %s715_s14, 1 }
  0x33   : > { %s863_s19 = scalar_lea.hbm %s1008_s1, %s483_s8  ;;  %s159_s20 = scalar_lea.vmem [#allocation5], %s482_s7 }
  0x34   : > { %p856_p11 = pnand %p1017_p9, %p172_p12  ;;  %s167_s26 = sshll.u32 %s159_s20, 4  ;;  %s168_s26 = int_to_ptr.vmem [resolvable:$true] %s167_s26 }
  0x35   : > { %s156_s30 = scalar_lea.sflag [#allocation6], %s805_s25  ;;  %s599_s4 = scalar_lea.hbm %s863_s19, 32 }
  0x36   : > { %s1018_s15 = scalar_select %p856_p11, 1, 0 }
  0x37   : > { %p600_p1 = scmp.ne.s32.totalorder %s863_s19, %s599_s4  ;;  %s604_s28 = scalar_lea.hbm %s1008_s1, 64 }
  0x38   : > { %p605_p2 = scmp.lt.u32.totalorder %s863_s19, %s1008_s1  ;;  %p606_p5 = scmp.lt.u32.totalorder %s604_s28, %s599_s4 }
  0x39   : > { %p602_p6 = pnand %p600_p1, %p571_p3  ;;  %p608_p7 = scmp.lt.u32.totalorder %s599_s4, %s863_s19 }
  0x3a   : > { %p607_p4 = por %p606_p5, %p605_p2 }
  0x3b   : > { %p603_p13 = pneg %p602_p6 }
  0x3c   : > { %p609_p10 = por %p608_p7, %p607_p4 }
  0x3e   : > { %p610_p12 = pnand %p609_p10, %p603_p13 }
  0x40   : > { %613 = shalt.err (!%p610_p12)
}
  0x41   : > { %s614_s25 = scalar_lea.vmem %s168_s26, 32  ;;  %s720_s7 = smov [#allocation5]  }
  0x42   : > { %p615_p9 = scmp.ne.s32.totalorder %s168_s26, %s614_s25  ;;  %s619_s8 = sshll.u32 %s720_s7, 4  ;;  %s620_s8 = int_to_ptr.vmem [resolvable:$false] %s619_s8 }
  0x43   : > { %s621_s16 = scalar_lea.vmem %s620_s8, 64  ;;  %p622_p8 = scmp.lt.s32.totalorder %s168_s26, %s620_s8 }
  0x44   : > { %p617_p1 = pnand %p615_p9, %p571_p3  ;;  %p623_p11 = scmp.lt.s32.totalorder %s621_s16, %s614_s25 }
  0x46   : > { %p618_p6 = pneg %p617_p1  ;;  %p624_p2 = por %p623_p11, %p622_p8 }
  0x48   : > { %p625_p5 = pnand %p624_p2, %p618_p6 }
  0x4a   : > { %628 = shalt.err (!%p625_p5)
}
  0x4b   : > { %509 = dma.hbm_to_vmem [thread:$0]  (!%p818_p0), %s863_s19, 32, %s168_s26, %s156_s30  }
  0x4c   : > { %p1019_p13 = scmp.ne.s32.totalorder %s1018_s15, 0 }
  0x4d   : > { %s888_s18 = sand.u32 (!%p1019_p13), 1, %s699_s10   ;;  %p1020_p3 = scmp.ne.s32.totalorder (!%p1019_p13), %s1013_s21, 0 }
  0x4e   : > { %176 = sbr.rel (%p1019_p13) target bundleno = 143 (0x8f), region = 28  ;;  %s485_s20 = sshll.u32 (!%p1019_p13), %s888_s18, 3 }
  0x4f   : > { %s179_s4 = scalar_lea.sflag (!%p1019_p13), [#allocation3], %s888_s18  ;;  %s182_s6 = scalar_lea.vmem (!%p1019_p13), [#allocation2], %s485_s20 }
  0x55   : > { %682 = dma.done.wait (%p1020_p3), %s179_s4, 128  }
  0x56   : > { %684 = vsyncadd (%p1020_p3), %s179_s4, 4294967168  ;;  %s486_s5 = sshll.u32 %s888_s18, 1  ;;  %s188_s15 = scalar_lea.sflag [#allocation6], %s888_s18 }
  0x57   : > { %s191_s19 = scalar_lea.vmem [#allocation5], %s486_s5 }
  0x58   : > { %686 = dma.done.wait (%p1020_p3), %s188_s15, 32  }
  0x59   : > { %688 = vsyncadd (%p1020_p3), %s188_s15, 4294967264  ;;  %s495_s26 = smul.u32 12, %s888_s18  ;;  %v721_v0 = vmov 0.0   ;;  %vm236_vm0 = vcmask 1041408   ;;  %v231_v1 = vld [vmem:[%s191_s19] sm:$0x3] }
  0x5a   : > { %v227_v2 = vld [vmem:[%s182_s6] sm:$0x3]  ;;  %v228_v3 = vld [vmem:[%s182_s6 + $0x2] sm:$0x3]  ;;  %vm232_vm1 = vcmp.eq.s32.totalorder %v231_v1, 0  ;;  %vm259_vm2 = vcmp.eq.s32.totalorder %v231_v1, 1 }
  0x5b   : > { %s903_s30 = scalar_lea.vmem [#allocation7], %s495_s26  ;;  %v229_v4 = vld [vmem:[%s182_s6 + $0x4] sm:$0x3]  ;;  %v230_v5 = vld [vmem:[%s182_s6 + $0x6] sm:$0x3]  ;;  %v244_v6 = vmul.f32 %v227_v2, %v227_v2  ;;  %v270_v7 = vmul.f32 %v228_v3, %v228_v3  ;;  %v908_v8 = vsel %vm232_vm1, 1.0, %v721_v0 }
  0x5c   : > { %221 = vst [vmem:[%s903_s30] sm:$0xf] %v721_v0  ;;  %222 = vst [vmem:[%s903_s30 + $0x4] sm:$0xf] %v721_v0  ;;  %v910_v9 = vsel %vm259_vm2, 1.0, %v721_v0  ;;  %vm285_vm3 = vcmp.eq.s32.totalorder %v231_v1, 2  ;;  %vm311_vm4 = vcmp.eq.s32.totalorder %v231_v1, 3  ;;  %v235_v10 = vmul.f32 %v908_v8, %v227_v2 }
  0x5d   : > { %223 = vst [vmem:[%s903_s30 + $0x8] sm:$0xf] %v721_v0  ;;  %v262_v11 = vmul.f32 %v910_v9, %v228_v3  ;;  %v914_v12 = vsel %vm285_vm3, 1.0, %v721_v0  ;;  %v916_v13 = vsel %vm311_vm4, 1.0, %v721_v0  ;;  %v245_v16 = vsel %vm236_vm0, %v244_v6, 0.0  ;;  %s496_s21 = smul.u32 192, %s707_s12 }
  0x5e   : > { %v288_v14 = vmul.f32 %v914_v12, %v229_v4  ;;  %v314_v15 = vmul.f32 %v916_v13, %v230_v5  ;;  %v271_v17 = vsel %vm236_vm0, %v270_v7, 0.0  ;;  %v237_v18 = vsel %vm236_vm0, %v235_v10, 0.0  ;;  %s368_s27 = sshll.u32 %s903_s30, 4  ;;  %s355_s12 = scalar_lea.sflag [#allocation4], %s888_s18  ;;  %s957_s27 = int_to_ptr.vmem [resolvable:$true] %s368_s27 }
  0x5f   : > { %v263_v19 = vsel %vm236_vm0, %v262_v11, 0.0  ;;  %v246_v20 = vrot.slane %v245_v16, 4  ;;  %v272_v21 = vrot.slane %v271_v17, 4  ;;  %v238_v22 = vrot.slane %v237_v18, 4  ;;  %s955_s3 = scalar_lea.hbm %s1009_s2, %s496_s21  ;;  %s629_s25 = scalar_lea.vmem %s957_s27, 192 }
  0x60   : > { %v264_v23 = vrot.slane %v263_v19, 4  ;;  %v289_v24 = vsel %vm236_vm0, %v288_v14, 0.0  ;;  %v315_v25 = vsel %vm236_vm0, %v314_v15, 0.0  ;;  %vm337_vm5 = vcmask 1040384   ;;  %p630_p8 = scmp.ne.s32.totalorder %s957_s27, %s629_s25  ;;  %p1021_p0 = scmp.ne.s32.totalorder %s1014_s22, 0 }
  0x61   : > { %v290_v26 = vrot.slane %v289_v24, 4  ;;  %v316_v27 = vrot.slane %v315_v25, 4  ;;  %v247_v28 = vadd.f32 %v246_v20, %v245_v16  ;;  %v273_v29 = vadd.f32 %v272_v21, %v271_v17  ;;  %s722_s7 = smov [#allocation7]  }
  0x62   : > { %v239_v30 = vadd.f32 %v238_v22, %v237_v18  ;;  %v265_v31 = vadd.f32 %v264_v23, %v263_v19  ;;  %v296_v32 = vmul.f32 %v229_v4, %v229_v4  ;;  %v322_v33 = vmul.f32 %v230_v5, %v230_v5  ;;  %p631_p11 = pnand %p630_p8, %p1021_p0  ;;  %s633_s8 = sshll.u32 %s722_s7, 4  ;;  %s634_s8 = int_to_ptr.vmem [resolvable:$false] %s633_s8 }
  0x63   : > { %v291_v34 = vadd.f32 %v290_v26, %v289_v24  ;;  %v317_v35 = vadd.f32 %v316_v27, %v315_v25  ;;  %vm340_vm6 = vcmask 1042432   ;;  %v248_v36 = vrot.slane %v247_v28, 2  ;;  %v224_v6 = vld [vmem:[%s903_s30] sm:$0xf]  ;;  %s635_s16 = scalar_lea.vmem %s634_s8, 384  ;;  %p636_p7 = scmp.lt.s32.totalorder %s957_s27, %s634_s8 }
  0x64   : > { %v274_v37 = vrot.slane %v273_v29, 2  ;;  %v240_v38 = vrot.slane %v239_v30, 2  ;;  %v266_v39 = vrot.slane %v265_v31, 2  ;;  %v297_v40 = vsel %vm236_vm0, %v296_v32, 0.0  ;;  %p632_p4 = pneg %p631_p11  ;;  %p637_p10 = scmp.lt.s32.totalorder %s635_s16, %s629_s25 }
  0x65   : > { %v323_v41 = vsel %vm236_vm0, %v322_v33, 0.0  ;;  %v292_v42 = vrot.slane %v291_v34, 2  ;;  %v318_v43 = vrot.slane %v317_v35, 2  ;;  %v249_v44 = vadd.f32 %v248_v36, %v247_v28 }
  0x66   : > { %v275_v45 = vadd.f32 %v274_v37, %v273_v29  ;;  %v241_v46 = vadd.f32 %v240_v38, %v239_v30  ;;  %v267_v47 = vadd.f32 %v266_v39, %v265_v31  ;;  %v298_v48 = vrot.slane %v297_v40, 4  ;;  %p638_p12 = por %p637_p10, %p636_p7 }
  0x67   : > { %v324_v49 = vrot.slane %v323_v41, 4  ;;  %v293_v50 = vadd.f32 %v292_v42, %v291_v34  ;;  %v319_v51 = vadd.f32 %v318_v43, %v317_v35  ;;  %v250_v52 = vrot.slane %v249_v44, 1 }
  0x68   : > { %v276_v53 = vrot.slane %v275_v45, 1  ;;  %v242_v54 = vrot.slane %v241_v46, 1  ;;  %v268_v55 = vrot.slane %v267_v47, 1  ;;  %v299_v56 = vadd.f32 %v298_v48, %v297_v40  ;;  %v226_v48 = vld [vmem:[%s903_s30 + $0x8] sm:$0xf]  ;;  %p639_p9 = pnand %p638_p12, %p632_p4 }
  0x69   : > { %v325_v57 = vadd.f32 %v324_v49, %v323_v41  ;;  %v294_v58 = vrot.slane %v293_v50, 1  ;;  %v320_v59 = vrot.slane %v319_v51, 1  ;;  %v251_v60 = vadd.f32 %v250_v52, %v249_v44 }
  0x6a   : > { %v277_v61 = vadd.f32 %v276_v53, %v275_v45  ;;  %v243_v62 = vadd.f32 %v242_v54, %v241_v46  ;;  %v269_v63 = vadd.f32 %v268_v55, %v267_v47  ;;  %v300_v0 = vrot.slane %v299_v56, 2 }
  0x6b   : > { %v326_v1 = vrot.slane %v325_v57, 2  ;;  %v295_v2 = vadd.f32 %v294_v58, %v293_v50  ;;  %v321_v3 = vadd.f32 %v320_v59, %v319_v51  ;;  %v252_v5 = vsel %vm236_vm0, %v908_v8, 0.0 }
  0x6c   : > { %v342_v4 = vsel %vm337_vm5, %v251_v60, %v277_v61  ;;  %v338_v7 = vsel %vm337_vm5, %v243_v62, %v269_v63  ;;  %v301_v10 = vadd.f32 %v300_v0, %v299_v56  ;;  %v253_v14 = vrot.slane %v252_v5, 4 }
  0x6d   : > { %v327_v11 = vadd.f32 %v326_v1, %v325_v57  ;;  %v339_v15 = vsel %vm236_vm0, %v338_v7, %v295_v2  ;;  %v278_v16 = vsel %vm236_vm0, %v910_v9, 0.0  ;;  %v304_v17 = vsel %vm236_vm0, %v914_v12, 0.0  ;;  %v225_v9 = vld [vmem:[%s903_s30 + $0x4] sm:$0xf] }
  0x6e   : > { %v330_v18 = vsel %vm236_vm0, %v916_v13, 0.0  ;;  %v341_v8 = vsel %vm340_vm6, %v339_v15, %v321_v3  ;;  %v302_v19 = vrot.slane %v301_v10, 1  ;;  %v254_v21 = vadd.f32 %v253_v14, %v252_v5 }
  0x6f   : > { %v328_v20 = vrot.slane %v327_v11, 1  ;;  %v348_v22 = vadd.f32 %v341_v8, %v224_v6  ;;  %v279_v23 = vrot.slane %v278_v16, 4  ;;  %v305_v24 = vrot.slane %v304_v17, 4 }
  0x70   : > { %v331_v25 = vrot.slane %v330_v18, 4  ;;  %v303_v26 = vadd.f32 %v302_v19, %v301_v10  ;;  %v255_v28 = vrot.slane %v254_v21, 2 }
  0x71   : > { %v329_v27 = vadd.f32 %v328_v20, %v327_v11  ;;  %351 = vst [vmem:[%s903_s30] sm:$0xf] %v348_v22  ;;  %v280_v29 = vadd.f32 %v279_v23, %v278_v16  ;;  %v306_v12 = vadd.f32 %v305_v24, %v304_v17 }
  0x72   : > { %v332_v30 = vadd.f32 %v331_v25, %v330_v18  ;;  %v343_v13 = vsel %vm236_vm0, %v342_v4, %v303_v26  ;;  %v256_v31 = vadd.f32 %v255_v28, %v254_v21 }
  0x73   : > { %v344_v32 = vsel %vm340_vm6, %v343_v13, %v329_v27  ;;  %v281_v33 = vrot.slane %v280_v29, 2  ;;  %v307_v34 = vrot.slane %v306_v12, 2 }
  0x74   : > { %v333_v35 = vrot.slane %v332_v30, 2  ;;  %v349_v36 = vadd.f32 %v344_v32, %v225_v9  ;;  %v257_v37 = vrot.slane %v256_v31, 1 }
  0x75   : > { %v282_v38 = vadd.f32 %v281_v33, %v280_v29  ;;  %v308_v39 = vadd.f32 %v307_v34, %v306_v12 }
  0x76   : > { %v334_v40 = vadd.f32 %v333_v35, %v332_v30  ;;  %352 = vst [vmem:[%s903_s30 + $0x4] sm:$0xf] %v349_v36  ;;  %v258_v41 = vadd.f32 %v257_v37, %v256_v31 }
  0x77   : > { %v283_v42 = vrot.slane %v282_v38, 1  ;;  %v309_v43 = vrot.slane %v308_v39, 1 }
  0x78   : > { %v335_v44 = vrot.slane %v334_v40, 1 }
  0x79   : > { %v284_v45 = vadd.f32 %v283_v42, %v282_v38  ;;  %v310_v46 = vadd.f32 %v309_v43, %v308_v39 }
  0x7a   : > { %v336_v47 = vadd.f32 %v335_v44, %v334_v40 }
  0x7b   : > { %v345_v49 = vsel %vm337_vm5, %v258_v41, %v284_v45 }
  0x7c   : > { %v346_v50 = vsel %vm236_vm0, %v345_v49, %v310_v46 }
  0x7d   : > { %v347_v51 = vsel %vm340_vm6, %v346_v50, %v336_v47 }
  0x7e   : > { %v350_v52 = vadd.f32 %v347_v51, %v226_v48 }
  0x80   : > { %353 = vst [vmem:[%s903_s30 + $0x8] sm:$0xf] %v350_v52 }
  0x81   : > { %642 = shalt.err (!%p639_p9)
}
  0x82   : > { %s643_s20 = scalar_lea.hbm %s955_s3, 192  ;;  %s647_s5 = scalar_lea.hbm %s1009_s2, 384 }
  0x83   : > { %p644_p1 = scmp.ne.s32.totalorder %s955_s3, %s643_s20  ;;  %p648_p5 = scmp.lt.u32.totalorder %s955_s3, %s1009_s2 }
  0x84   : > { %p649_p13 = scmp.lt.u32.totalorder %s647_s5, %s643_s20  ;;  %p651_p8 = scmp.lt.u32.totalorder %s643_s20, %s955_s3 }
  0x85   : > { %p645_p6 = pnand %p644_p1, %p1021_p0 }
  0x86   : > { %p650_p3 = por %p649_p13, %p648_p5 }
  0x87   : > { %p646_p2 = pneg %p645_p6 }
  0x88   : > { %p652_p11 = por %p651_p8, %p650_p3 }
  0x8a   : > { %p653_p4 = pnand %p652_p11, %p646_p2 }
  0x8c   : > { %656 = shalt.err (!%p653_p4)
}
  0x8d   : > { %s723_s26 = smov 64   ;;  %s724_s30 = smov 4  }
  0x8e   : > { %501 = dma.vmem_to_hbm [thread:$0]  (%p1021_p0), %s957_s27, 192, %s955_s3, %s355_s12, %s723_s26, %s723_s26, %s724_s30  }
  0x8f PF: > { %s383_s21 = sand.u32 1, %s695_s9   ;;  %p1022_p7 = scmp.ne.s32.totalorder %s1015_s24, 0 }
  0x90   : > { %p1023_p10 = scmp.ge.s32.totalorder %s715_s14, 2  ;;  %s384_s28 = scalar_lea.sflag [#allocation4], %s383_s21 }
  0x92   : > { %p511_p12 = pnand %p1023_p10, %p1022_p7 }
  0x94   : > { %690 = dma.done.wait (!%p511_p12), %s384_s28, 192  }
  0x95   : > { %692 = vsyncadd (!%p511_p12), %s384_s28, 4294967104  ;;  %s21_s14 = sadd.s32 1, %s715_s14   ;;  %s1024_s9 = smov %s699_s10 }
  0x96   : > { %p18_p9 = scmp.ge.s32.totalorder %s21_s14, 4   ;;  %s1025_s10 = smov %s703_s11 }
  0x97   : > { %s1026_s11 = smov %s796_s23  ;;  %s1027_s12 = smov %s711_s13 }
  0x98   : > { %s1028_s13 = smov %s1030_s17  ;;  %20 = sbr.rel (!%p18_p9) target bundleno = 8 (0x8), region = 90 }
  0x9f   :  { %389 = vsyncpa [#allocation3], 1 }
  0xa0   :  { %391 = vsyncpa [#allocation3 + $0x1], 1 }
  0xa1   :  { %392 = vsyncpa [#allocation6], 1 }
  0xa2   :  { %394 = vsyncpa [#allocation6 + $0x1], 1 }
  0xa3   :  { %395 = vsyncpa [#allocation4], 1 }
  0xa4   :  { %397 = vsyncpa [#allocation4 + $0x1], 1 }

</bundles_post_ra>
